<compile_context>
chip_gen: v7x
topology: tpu7x:2x2x1
jax: 0.10.0
libtpu: 0.0.40
codegen_flags: <defaults>
</compile_context>

<pallas_src>
import functools

import numpy as np
import jax
import jax.numpy as jnp
from jax import lax
from jax.experimental import pallas as pl
from jax.experimental.pallas import tpu as pltpu


def _round_up(x, m):
    return (x + m - 1) // m * m


def _mlp_kernel(x_ref, w1_ref, b1_ref, w2_ref, b2_ref,
                w3_ref, b3_ref, w4c_ref, b4_ref, o_ref,
                *, compute_dtype):
    """One batch tile.

    x_ref : (TILE_M, K)  batch-major input tile, HBM layout (cast in-VMEM).
    wN    : (out, in)    PyTorch nn.Linear layout (bf16 or f32), VMEM-resident.
    bN    : (out, 1)     f32 column biases.
    w4c   : (64, 1)      final layer as an f32 column for the VPU/XLU path.
    o_ref : (1, TILE_M)  lane-dense sigmoid output (batch on the lane axis).
    """
    x = x_ref[...].astype(compute_dtype)                        # (tm, K)

    # Layer 1: contract the K axes of W1 (64, K) and x (tm, K) directly; the
    # result is features x batch: (64, tm).  Mosaic handles the small in-VMEM
    # transpose, so the wrapper never touches x in HBM.
    h = lax.dot_general(w1_ref[...], x,
                        dimension_numbers=(((1,), (1,)), ((), ())),
                        preferred_element_type=jnp.float32)
    h = jnp.maximum(h + b1_ref[...], 0.0)                       # (64, tm) f32

    def dense_relu(w_ref, h, b_ref):
        y = jnp.dot(w_ref[...], h.astype(w_ref.dtype),
                    preferred_element_type=jnp.float32)
        return jnp.maximum(y + b_ref[...], 0.0)

    h = dense_relu(w2_ref, h, b2_ref)                           # (128, tm)
    h = dense_relu(w3_ref, h, b3_ref)                           # (64,  tm)

    # Final (1, 64) x (64, tm) layer on the VPU/XLU (broadcast-multiply +
    # sublane reduce) instead of burning an MXU push+drain for one useful row.
    z = jnp.sum(w4c_ref[...] * h, axis=0, keepdims=True) + b4_ref[...]  # (1, tm)

    if compute_dtype == jnp.float32:
        sig = 1.0 / (1.0 + jnp.exp(-z))          # exact sigmoid (accuracy path)
    else:
        # exp + approx reciprocal both use the otherwise-idle EUP slot.
        sig = pl.reciprocal(1.0 + jnp.exp(-z), approx=True)
    o_ref[...] = sig.astype(o_ref.dtype)


def substitute_model_forward(x, params, *, tile_m=2048, use_bf16_mxu=True):
    """Fused MLP forward.  x: (B, input_size) f32 -> (B, 1) f32.

    tile_m: batch tile (lane axis inside the kernel).  2048 is a good default
    for v6e/v7x; sweep ~1024-2048 on v5e (single vector-store slot).
    """
    (w1, b1), (w2, b2), (w3, b3), (w4, b4) = params
    B, K = x.shape
    compute_dtype = jnp.bfloat16 if use_bf16_mxu else jnp.float32

    # Weights are tiny (~75 KB): cast once here; they stay VMEM-resident via
    # constant index_maps.  w4 goes to the kernel as an f32 column (VPU path).
    w1c = w1.astype(compute_dtype)
    w2c = w2.astype(compute_dtype)
    w3c = w3.astype(compute_dtype)
    w4_col = w4.reshape(-1, 1).astype(jnp.float32)              # (64, 1)

    # Batch tile: multiple of 128 (lanes), big enough to amortize the
    # ~0.35us/step pipeline overhead + per-layer MXU drains, clamped so the
    # grid keeps >= 2 steps when B allows it (v7x megacore sharding).
    tm = _round_up(min(tile_m, B), 128)
    if B > 128:
        tm = min(tm, _round_up(pl.cdiv(B, 2), 128))
    grid_m = pl.cdiv(B, tm)

    const = lambda a: pl.BlockSpec(a.shape, lambda i: (0, 0))   # VMEM-resident

    out = pl.pallas_call(
        functools.partial(_mlp_kernel, compute_dtype=compute_dtype),
        out_shape=jax.ShapeDtypeStruct((1, B), jnp.float32),
        grid=(grid_m,),
        in_specs=[
            pl.BlockSpec((tm, K), lambda i: (i, 0)),            # stream batch
            const(w1c), const(b1),
            const(w2c), const(b2),
            const(w3c), const(b3),
            const(w4_col), const(b4),
        ],
        out_specs=pl.BlockSpec((1, tm), lambda i: (0, i)),      # lane-dense
        compiler_params=pltpu.CompilerParams(
            dimension_semantics=("parallel",)),                 # v7x megacore
    )(x, w1c, b1, w2c, b2, w3c, b3, w4_col, b4)

    return out.reshape(B, 1)


def init_params(key, input_size):
    """nn.Linear-style init, PyTorch layout: W (out, in), b (out, 1)."""
    dims = [(input_size, 64), (64, 128), (128, 64), (64, 1)]
    params = []
    for fan_in, fan_out in dims:
        key, kw, kb = jax.random.split(key, 3)
        bound = 1.0 / (fan_in ** 0.5)
        w = jax.random.uniform(kw, (fan_out, fan_in), jnp.float32, -bound, bound)
        b = jax.random.uniform(kb, (fan_out, 1), jnp.float32, -bound, bound)
        params.append((w, b))
    return params


def reference_forward(x, params):
    """float64 numpy reference with PyTorch semantics (no MXU ambiguity)."""
    x = np.asarray(x, dtype=np.float64)
    (w1, b1), (w2, b2), (w3, b3), (w4, b4) = [
        (np.asarray(w, np.float64), np.asarray(b, np.float64)) for w, b in params]
    h = np.maximum(x @ w1.T + b1.T, 0.0)
    h = np.maximum(h @ w2.T + b2.T, 0.0)
    h = np.maximum(h @ w3.T + b3.T, 0.0)
    z = h @ w4.T + b4.T
    return 1.0 / (1.0 + np.exp(-z))


if __name__ == "__main__":
    key = jax.random.PRNGKey(0)
    batch = 8
    input_size = 32

    key, kx = jax.random.split(key)
    x = jax.random.normal(kx, (batch, input_size), dtype=jnp.float32)
    params = init_params(key, input_size)

    ref = reference_forward(x, params)

    # Accuracy-first f32 path.
    out_f32 = jax.block_until_ready(
        substitute_model_forward(x, params, use_bf16_mxu=False))
    assert out_f32.shape == (batch, 1)
    err_f32 = float(np.max(np.abs(np.asarray(out_f32, np.float64) - ref)))
    assert err_f32 < 3e-3, f"f32 max_err={err_f32}"

    # Default inference path: bf16 MXU inputs, f32 accumulate / activations.
    out_bf16 = jax.block_until_ready(substitute_model_forward(x, params))
    assert out_bf16.shape == (batch, 1)
    err_bf16 = float(np.max(np.abs(np.asarray(out_bf16, np.float64) - ref)))
    assert err_bf16 < 3e-2, f"bf16 max_err={err_bf16}"

    print("KERNEL_OK")
</pallas_src>

<mosaic_0001>
module attributes {stable_mosaic.version = 11 : i64} {
  func.func @_mlp_kernel(%arg0: i32, %arg1: memref<128x32xf32, #tpu.memory_space<vmem>>, %arg2: memref<64x32xf32, #tpu.memory_space<vmem>>, %arg3: memref<64x1xf32, #tpu.memory_space<vmem>>, %arg4: memref<128x64xf32, #tpu.memory_space<vmem>>, %arg5: memref<128x1xf32, #tpu.memory_space<vmem>>, %arg6: memref<64x128xf32, #tpu.memory_space<vmem>>, %arg7: memref<64x1xf32, #tpu.memory_space<vmem>>, %arg8: memref<64x1xf32, #tpu.memory_space<vmem>>, %arg9: memref<1x1xf32, #tpu.memory_space<vmem>>, %arg10: memref<1x128xf32, #tpu.memory_space<vmem>>) attributes {dimension_semantics = [#tpu.dimension_semantics<parallel>], iteration_bounds = array<i64: 1>, scalar_prefetch = 0 : i64, scratch_operands = 0 : i64, tpu.core_type = #tpu.core_type<tc>, window_params = [{transform_indices = @transform_0, window_bounds = array<i64: 128, 32>}, {pipeline_mode = #tpu.pipeline_mode<synchronous>, transform_indices = @transform_1, window_bounds = array<i64: 64, 32>}, {pipeline_mode = #tpu.pipeline_mode<synchronous>, transform_indices = @transform_2, window_bounds = array<i64: 64, 1>}, {pipeline_mode = #tpu.pipeline_mode<synchronous>, transform_indices = @transform_3, window_bounds = array<i64: 128, 64>}, {pipeline_mode = #tpu.pipeline_mode<synchronous>, transform_indices = @transform_4, window_bounds = array<i64: 128, 1>}, {pipeline_mode = #tpu.pipeline_mode<synchronous>, transform_indices = @transform_5, window_bounds = array<i64: 64, 128>}, {pipeline_mode = #tpu.pipeline_mode<synchronous>, transform_indices = @transform_6, window_bounds = array<i64: 64, 1>}, {pipeline_mode = #tpu.pipeline_mode<synchronous>, transform_indices = @transform_7, window_bounds = array<i64: 64, 1>}, {pipeline_mode = #tpu.pipeline_mode<synchronous>, transform_indices = @transform_8, window_bounds = array<i64: 1, 1>}, {transform_indices = @transform_9, window_bounds = array<i64: 1, 128>}]} {
    %c0 = arith.constant 0 : index
    %c0_0 = arith.constant 0 : index
    %0 = vector.load %arg1[%c0, %c0_0] : memref<128x32xf32, #tpu.memory_space<vmem>>, vector<128x32xf32>
    %c0_1 = arith.constant 0 : index
    %c0_2 = arith.constant 0 : index
    %1 = vector.load %arg2[%c0_1, %c0_2] : memref<64x32xf32, #tpu.memory_space<vmem>>, vector<64x32xf32>
    %cst = arith.constant dense<0.000000e+00> : vector<64x128xf32>
    %2 = tpu.matmul %1, %0, %cst {dimension_numbers = #tpu.dot_dimension_numbers<[1], [1], [0], [0], [0, 0, 1, 0], [], []>} : vector<64x32xf32>, vector<128x32xf32>, vector<64x128xf32> -> vector<64x128xf32>
    %c0_3 = arith.constant 0 : index
    %c0_4 = arith.constant 0 : index
    %3 = vector.load %arg3[%c0_3, %c0_4] : memref<64x1xf32, #tpu.memory_space<vmem>>, vector<64x1xf32>
    %4 = vector.broadcast %3 : vector<64x1xf32> to vector<64x128xf32>
    %5 = arith.addf %2, %4 : vector<64x128xf32>
    %cst_5 = arith.constant 0.000000e+00 : f32
    %6 = vector.broadcast %cst_5 : f32 to vector<64x128xf32>
    %7 = arith.maximumf %5, %6 : vector<64x128xf32>
    %c0_6 = arith.constant 0 : index
    %c0_7 = arith.constant 0 : index
    %8 = vector.load %arg4[%c0_6, %c0_7] : memref<128x64xf32, #tpu.memory_space<vmem>>, vector<128x64xf32>
    %cst_8 = arith.constant dense<0.000000e+00> : vector<128x128xf32>
    %9 = tpu.matmul %8, %7, %cst_8 {dimension_numbers = #tpu.dot_dimension_numbers<[1], [0], [0], [1], [0, 0, 1, 1], [], []>} : vector<128x64xf32>, vector<64x128xf32>, vector<128x128xf32> -> vector<128x128xf32>
    %c0_9 = arith.constant 0 : index
    %c0_10 = arith.constant 0 : index
    %10 = vector.load %arg5[%c0_9, %c0_10] : memref<128x1xf32, #tpu.memory_space<vmem>>, vector<128x1xf32>
    %11 = vector.broadcast %10 : vector<128x1xf32> to vector<128x128xf32>
    %12 = arith.addf %9, %11 : vector<128x128xf32>
    %cst_11 = arith.constant 0.000000e+00 : f32
    %13 = vector.broadcast %cst_11 : f32 to vector<128x128xf32>
    %14 = arith.maximumf %12, %13 : vector<128x128xf32>
    %c0_12 = arith.constant 0 : index
    %c0_13 = arith.constant 0 : index
    %15 = vector.load %arg6[%c0_12, %c0_13] : memref<64x128xf32, #tpu.memory_space<vmem>>, vector<64x128xf32>
    %cst_14 = arith.constant dense<0.000000e+00> : vector<64x128xf32>
    %16 = tpu.matmul %15, %14, %cst_14 {dimension_numbers = #tpu.dot_dimension_numbers<[1], [0], [0], [1], [0, 0, 1, 1], [], []>} : vector<64x128xf32>, vector<128x128xf32>, vector<64x128xf32> -> vector<64x128xf32>
    %c0_15 = arith.constant 0 : index
    %c0_16 = arith.constant 0 : index
    %17 = vector.load %arg7[%c0_15, %c0_16] : memref<64x1xf32, #tpu.memory_space<vmem>>, vector<64x1xf32>
    %18 = vector.broadcast %17 : vector<64x1xf32> to vector<64x128xf32>
    %19 = arith.addf %16, %18 : vector<64x128xf32>
    %cst_17 = arith.constant 0.000000e+00 : f32
    %20 = vector.broadcast %cst_17 : f32 to vector<64x128xf32>
    %21 = arith.maximumf %19, %20 : vector<64x128xf32>
    %c0_18 = arith.constant 0 : index
    %c0_19 = arith.constant 0 : index
    %22 = vector.load %arg8[%c0_18, %c0_19] : memref<64x1xf32, #tpu.memory_space<vmem>>, vector<64x1xf32>
    %23 = vector.broadcast %22 : vector<64x1xf32> to vector<64x128xf32>
    %24 = arith.mulf %23, %21 : vector<64x128xf32>
    %cst_20 = arith.constant dense<0.000000e+00> : vector<128xf32>
    %25 = vector.multi_reduction <add>, %24, %cst_20 [0] : vector<64x128xf32> to vector<128xf32>
    %26 = vector.shape_cast %25 : vector<128xf32> to vector<1x128xf32>
    %c0_21 = arith.constant 0 : index
    %c0_22 = arith.constant 0 : index
    %27 = vector.load %arg9[%c0_21, %c0_22] : memref<1x1xf32, #tpu.memory_space<vmem>>, vector<1x1xf32>
    %28 = vector.broadcast %27 : vector<1x1xf32> to vector<1x128xf32>
    %29 = arith.addf %26, %28 : vector<1x128xf32>
    %cst_23 = arith.constant 0.000000e+00 : f32
    %30 = vector.broadcast %cst_23 : f32 to vector<1x128xf32>
    %31 = arith.subf %30, %29 : vector<1x128xf32>
    %32 = math.exp %31 : vector<1x128xf32>
    %cst_24 = arith.constant 1.000000e+00 : f32
    %33 = vector.broadcast %cst_24 : f32 to vector<1x128xf32>
    %34 = arith.addf %33, %32 : vector<1x128xf32>
    %cst_25 = arith.constant 1.000000e+00 : f32
    %35 = vector.broadcast %cst_25 : f32 to vector<1x128xf32>
    %36 = arith.divf %35, %34 : vector<1x128xf32>
    %c0_26 = arith.constant 0 : index
    %c0_27 = arith.constant 0 : index
    %37 = vector.load %arg10[%c0_26, %c0_27] : memref<1x128xf32, #tpu.memory_space<vmem>>, vector<1x128xf32>
    tpu.vector_store %arg10[%c0_26, %c0_27], %36 {strides = array<i32>} : memref<1x128xf32, #tpu.memory_space<vmem>>, vector<1x128xf32>,
    return
  }
  func.func @transform_0(%arg0: i32) -> (i32, i32) {
    %c0_i32 = arith.constant 0 : i32
    %c0_i32_0 = arith.constant 0 : i32
    return %arg0, %c0_i32 : i32, i32
  }
  func.func @transform_1(%arg0: i32) -> (i32, i32) {
    %c0_i32 = arith.constant 0 : i32
    %c0_i32_0 = arith.constant 0 : i32
    %c0_i32_1 = arith.constant 0 : i32
    return %c0_i32, %c0_i32_0 : i32, i32
  }
  func.func @transform_2(%arg0: i32) -> (i32, i32) {
    %c0_i32 = arith.constant 0 : i32
    %c0_i32_0 = arith.constant 0 : i32
    %c0_i32_1 = arith.constant 0 : i32
    return %c0_i32, %c0_i32_0 : i32, i32
  }
  func.func @transform_3(%arg0: i32) -> (i32, i32) {
    %c0_i32 = arith.constant 0 : i32
    %c0_i32_0 = arith.constant 0 : i32
    %c0_i32_1 = arith.constant 0 : i32
    return %c0_i32, %c0_i32_0 : i32, i32
  }
  func.func @transform_4(%arg0: i32) -> (i32, i32) {
    %c0_i32 = arith.constant 0 : i32
    %c0_i32_0 = arith.constant 0 : i32
    %c0_i32_1 = arith.constant 0 : i32
    return %c0_i32, %c0_i32_0 : i32, i32
  }
  func.func @transform_5(%arg0: i32) -> (i32, i32) {
    %c0_i32 = arith.constant 0 : i32
    %c0_i32_0 = arith.constant 0 : i32
    %c0_i32_1 = arith.constant 0 : i32
    return %c0_i32, %c0_i32_0 : i32, i32
  }
  func.func @transform_6(%arg0: i32) -> (i32, i32) {
    %c0_i32 = arith.constant 0 : i32
    %c0_i32_0 = arith.constant 0 : i32
    %c0_i32_1 = arith.constant 0 : i32
    return %c0_i32, %c0_i32_0 : i32, i32
  }
  func.func @transform_7(%arg0: i32) -> (i32, i32) {
    %c0_i32 = arith.constant 0 : i32
    %c0_i32_0 = arith.constant 0 : i32
    %c0_i32_1 = arith.constant 0 : i32
    return %c0_i32, %c0_i32_0 : i32, i32
  }
  func.func @transform_8(%arg0: i32) -> (i32, i32) {
    %c0_i32 = arith.constant 0 : i32
    %c0_i32_0 = arith.constant 0 : i32
    %c0_i32_1 = arith.constant 0 : i32
    return %c0_i32, %c0_i32_0 : i32, i32
  }
  func.func @transform_9(%arg0: i32) -> (i32, i32) {
    %c0_i32 = arith.constant 0 : i32
    %c0_i32_0 = arith.constant 0 : i32
    return %c0_i32, %arg0 : i32, i32
  }
}

</mosaic_0001>

<bundles_post_ra>
// kernel: tpu_custom_call.1
= control target key start
LH: loop header
LB: loop body
LE: loop exit
PB: predicated region body
PF: predicated region fallthrough
CT: control target
= control target key end

     0   :  { %s1646_s0 = inlined_call_operand.vmem [shape: f32[8,32], index: 0, kind: input, shape index: {}]   ;;  %s1647_s1 = inlined_call_operand.vmem [shape: f32[64,32], index: 1, kind: input, shape index: {}]   ;;  %s1648_s2 = inlined_call_operand.vmem [shape: f32[64,1], index: 2, kind: input, shape index: {}]   ;;  %s1649_s3 = inlined_call_operand.vmem [shape: f32[128,64], index: 3, kind: input, shape index: {}]   ;;  %s1650_s4 = inlined_call_operand.vmem [shape: f32[128,1], index: 4, kind: input, shape index: {}]   ;;  %s1651_s5 = inlined_call_operand.vmem [shape: f32[64,128], index: 5, kind: input, shape index: {}]   ;;  %s1652_s6 = inlined_call_operand.vmem [shape: f32[64,1], index: 6, kind: input, shape index: {}]   ;;  %s1653_s7 = inlined_call_operand.vmem [shape: f32[64,1], index: 7, kind: input, shape index: {}]   ;;  %s1654_s8 = inlined_call_operand.<no memory space> [shape: f32[1,1], index: 8, kind: input, shape index: {}]   ;;  %s1655_s9 = inlined_call_operand.hbm [shape: f32[1,8], index: 9, kind: output, shape index: {}]  }
   0x1   :  { %v14_v0 = vstv %s1654_s8 }
   0x2   :  { %15 = vst [vmem:[#allocation2] sm:$0x1] %v14_v0 }
   0x3   :  { %v35_v1 = vld [vmem:[%s1646_s0] sm:$0xff]  ;;  %v36_v2 = vld [vmem:[%s1646_s0 + $0x8] sm:$0xff]  ;;  %vm107_vm0 = vcmask 261120   ;;  %v37_v3 = vld [vmem:[%s1646_s0 + $0x10] sm:$0xff]  ;;  %v1253_v7 = vmov 0  }
   0x4   :  { %v1125_v4 = vpack.c.bf16 %v36_v2, %v35_v1  ;;  %vm1319_vm1 = vmpackc.low %vm107_vm0, %vm107_vm0  ;;  %v38_v6 = vld [vmem:[%s1646_s0 + $0x18] sm:$0xff]  ;;  %1223 = vset.pattern.permute.xlu0 %v1253_v7  ;;  %1224 = vset.pattern.permute.xlu1 %v1253_v7  ;;  %v51_v9 = vld [vmem:[%s1647_s1] sm:$0xff] }
   0x5   :  { %v1131_v8 = vpack.c.bf16 %v38_v6, %v37_v3  ;;  %v39_v10 = vld [vmem:[%s1646_s0 + $0x20] sm:$0xff]  ;;  %v40_v11 = vld [vmem:[%s1646_s0 + $0x28] sm:$0xff]  ;;  %1029 = vmatprep.mubr.msk.f32.mxu0 %vm107_vm0, %v51_v9  ;;  %v61_v14 = vld [vmem:[%s1648_s2 + $0x10] sm:$0xff] }
   0x6   :  { %1127 = vmatprep.subr.msk.bf16.mxu0 %vm1319_vm1, %v1125_v4  ;;  %v59_v12 = vld [vmem:[%s1648_s2] sm:$0xff]  ;;  %v60_v13 = vld [vmem:[%s1648_s2 + $0x8] sm:$0xff]  ;;  %v1137_v15 = vpack.c.bf16 %v40_v11, %v39_v10  ;;  %79 = vperm.xlu1 %1224, %v61_v14   ;;  %v62_v16 = vld [vmem:[%s1648_s2 + $0x18] sm:$0xff] }
   0x7   :  { %1130 = vmatpush3.bf16.xpose.msk.msra.mxu0 %vm1319_vm1, %v1125_v4  ;;  %69 = vperm.xlu0 %1223, %v59_v12   ;;  %v63_v17 = vld [vmem:[%s1648_s2 + $0x20] sm:$0xff]  ;;  %v41_v18 = vld [vmem:[%s1646_s0 + $0x30] sm:$0xff]  ;;  %v42_v19 = vld [vmem:[%s1646_s0 + $0x38] sm:$0xff] }
   0x8   :  { %1133 = vmatprep.subr.msk.bf16.mxu0 %vm1319_vm1, %v1131_v8  ;;  %v64_v20 = vld [vmem:[%s1648_s2 + $0x28] sm:$0xff]  ;;  %v65_v21 = vld [vmem:[%s1648_s2 + $0x30] sm:$0xff]  ;;  %v1143_v22 = vpack.c.bf16 %v42_v19, %v41_v18  ;;  %v66_v23 = vld [vmem:[%s1648_s2 + $0x38] sm:$0xff] }
   0x9   :  { %v309_v24 = vld [vmem:[%s1650_s4] sm:$0xff]  ;;  %v44_v26 = vld [vmem:[%s1646_s0 + $0x48] sm:$0xff] }
   0xa   :  { %84 = vperm.xlu1 %1224, %v62_v16   ;;  %v43_v25 = vld [vmem:[%s1646_s0 + $0x40] sm:$0xff]  ;;  %v310_v27 = vld [vmem:[%s1650_s4 + $0x8] sm:$0xff] }
   0xb   :  { %74 = vperm.xlu0 %1223, %v60_v13  }
   0xe   :  { %94 = vperm.xlu1 %1224, %v64_v20  }
   0xf   :  { %1136 = vmatpush3.bf16.xpose.msk.msra.mxu0 %vm1319_vm1, %v1131_v8  ;;  %89 = vperm.xlu0 %1223, %v63_v17  }
  0x10   :  { %1139 = vmatprep.subr.msk.bf16.mxu0 %vm1319_vm1, %v1137_v15 }
  0x12   :  { %104 = vperm.xlu1 %1224, %v66_v23  }
  0x13   :  { %99 = vperm.xlu0 %1223, %v65_v21  }
  0x17   :  { %1142 = vmatpush3.bf16.xpose.msk.msra.mxu0 %vm1319_vm1, %v1137_v15 }
  0x18   :  { %1145 = vmatprep.subr.msk.bf16.mxu0 %vm1319_vm1, %v1143_v22 }
  0x19   :  { %16 = vsyncpa [#allocation4], 0  ;;  %327 = vperm.xlu0 %1223, %v309_v24   ;;  %v311_v28 = vld [vmem:[%s1650_s4 + $0x10] sm:$0xff]  ;;  %v1149_v29 = vpack.c.bf16 %v44_v26, %v43_v25  ;;  %332 = vperm.xlu1 %1224, %v310_v27   ;;  %v312_v30 = vld [vmem:[%s1650_s4 + $0x18] sm:$0xff]  ;;  %vm405_vm2 = vcmask 523264  }
  0x1a   :  { %v313_v31 = vld [vmem:[%s1650_s4 + $0x20] sm:$0xff]  ;;  %v45_v32 = vld [vmem:[%s1646_s0 + $0x50] sm:$0xff]  ;;  %v46_v33 = vld [vmem:[%s1646_s0 + $0x58] sm:$0xff] }
  0x1b   :  { %v314_v34 = vld [vmem:[%s1650_s4 + $0x28] sm:$0xff]  ;;  %v315_v35 = vld [vmem:[%s1650_s4 + $0x30] sm:$0xff]  ;;  %v1155_v36 = vpack.c.bf16 %v46_v33, %v45_v32  ;;  %v316_v37 = vld [vmem:[%s1650_s4 + $0x38] sm:$0xff] }
  0x1c   :  { %v317_v38 = vld [vmem:[%s1650_s4 + $0x40] sm:$0xff]  ;;  %v48_v40 = vld [vmem:[%s1646_s0 + $0x68] sm:$0xff]  ;;  %v319_v42 = vld [vmem:[%s1650_s4 + $0x50] sm:$0xff] }
  0x1d   :  { %337 = vperm.xlu0 %1223, %v311_v28   ;;  %342 = vperm.xlu1 %1224, %v312_v30   ;;  %v47_v39 = vld [vmem:[%s1646_s0 + $0x60] sm:$0xff]  ;;  %v318_v41 = vld [vmem:[%s1650_s4 + $0x48] sm:$0xff]  ;;  %v320_v44 = vld [vmem:[%s1650_s4 + $0x58] sm:$0xff] }
  0x1e   :  { %v1161_v43 = vpack.c.bf16 %v48_v40, %v47_v39  ;;  %v321_v45 = vld [vmem:[%s1650_s4 + $0x60] sm:$0xff]  ;;  %v49_v46 = vld [vmem:[%s1646_s0 + $0x70] sm:$0xff]  ;;  %v50_v47 = vld [vmem:[%s1646_s0 + $0x78] sm:$0xff] }
  0x1f   :  { %1148 = vmatpush3.bf16.xpose.msk.msra.mxu0 %vm1319_vm1, %v1143_v22  ;;  %v322_v48 = vld [vmem:[%s1650_s4 + $0x68] sm:$0xff]  ;;  %v323_v49 = vld [vmem:[%s1650_s4 + $0x70] sm:$0xff]  ;;  %v1167_v50 = vpack.c.bf16 %v50_v47, %v49_v46  ;;  %v324_v51 = vld [vmem:[%s1650_s4 + $0x78] sm:$0xff] }
  0x20   :  { %1151 = vmatprep.subr.msk.bf16.mxu0 %vm1319_vm1, %v1149_v29  ;;  %v623_v52 = vld [vmem:[%s1652_s6] sm:$0xff]  ;;  %v624_v53 = vld [vmem:[%s1652_s6 + $0x8] sm:$0xff]  ;;  %v625_v54 = vld [vmem:[%s1652_s6 + $0x10] sm:$0xff] }
  0x21   :  { %347 = vperm.xlu0 %1223, %v313_v31   ;;  %352 = vperm.xlu1 %1224, %v314_v34   ;;  %v626_v55 = vld [vmem:[%s1652_s6 + $0x18] sm:$0xff]  ;;  %v784_v56 = vld [vmem:[%s1653_s7] sm:$0xff]  ;;  %v785_v57 = vld [vmem:[%s1653_s7 + $0x8] sm:$0xff] }
  0x22   :  { %v52_v58 = vld [vmem:[%s1647_s1 + $0x8] sm:$0xff]  ;;  %v627_v59 = vld [vmem:[%s1652_s6 + $0x20] sm:$0xff]  ;;  %v53_v60 = vld [vmem:[%s1647_s1 + $0x10] sm:$0xff] }
  0x23   :  { %v786_v61 = vld [vmem:[%s1653_s7 + $0x10] sm:$0xff]  ;;  %v54_v62 = vld [vmem:[%s1647_s1 + $0x18] sm:$0xff]  ;;  %v628_v63 = vld [vmem:[%s1652_s6 + $0x28] sm:$0xff] }
  0x24   :  { %v55_v0 = vld [vmem:[%s1647_s1 + $0x20] sm:$0xff]  ;;  %v787_v1 = vld [vmem:[%s1653_s7 + $0x18] sm:$0xff]  ;;  %v56_v2 = vld [vmem:[%s1647_s1 + $0x28] sm:$0xff] }
  0x25   :  { %357 = vperm.xlu0 %1223, %v315_v35   ;;  %362 = vperm.xlu1 %1224, %v316_v37   ;;  %v629_v3 = vld [vmem:[%s1652_s6 + $0x30] sm:$0xff]  ;;  %v788_v5 = vld [vmem:[%s1653_s7 + $0x20] sm:$0xff]  ;;  %v58_v6 = vld [vmem:[%s1647_s1 + $0x38] sm:$0xff] }
  0x26   :  { %v57_v4 = vld [vmem:[%s1647_s1 + $0x30] sm:$0xff]  ;;  %v630_v7 = vld [vmem:[%s1652_s6 + $0x38] sm:$0xff]  ;;  %v789_v8 = vld [vmem:[%s1653_s7 + $0x28] sm:$0xff] }
  0x27   :  { %1154 = vmatpush3.bf16.xpose.msk.msra.mxu0 %vm1319_vm1, %v1149_v29  ;;  %v790_v9 = vld [vmem:[%s1653_s7 + $0x30] sm:$0xff]  ;;  %v791_v10 = vld [vmem:[%s1653_s7 + $0x38] sm:$0xff]  ;;  %v853_v11 = vld [vmem:[#allocation2] sm:$0x1] }
  0x28   :  { %1157 = vmatprep.subr.msk.bf16.mxu0 %vm1319_vm1, %v1155_v36  ;;  %v293_v12 = vld [vmem:[%s1649_s3] sm:$0xff] }
  0x29   :  { %367 = vperm.xlu0 %1223, %v317_v38   ;;  %372 = vperm.xlu1 %1224, %v318_v41  }
  0x2a   :  { %1057 = vmatprep.mubr.msk.f32.mxu1 %vm405_vm2, %v293_v12 }
  0x2d   :  { %377 = vperm.xlu0 %1223, %v319_v42   ;;  %382 = vperm.xlu1 %1224, %v320_v44  }
  0x2f   :  { %1160 = vmatpush3.bf16.xpose.msk.msra.mxu0 %vm1319_vm1, %v1155_v36 }
  0x30   :  { %1163 = vmatprep.subr.msk.bf16.mxu0 %vm1319_vm1, %v1161_v43 }
  0x31   :  { %387 = vperm.xlu0 %1223, %v321_v45   ;;  %392 = vperm.xlu1 %1224, %v322_v48  }
  0x35   :  { %397 = vperm.xlu0 %1223, %v323_v49   ;;  %402 = vperm.xlu1 %1224, %v324_v51   ;;  %v294_v49 = vld [vmem:[%s1649_s3 + $0x8] sm:$0xff]  ;;  %v296_v51 = vld [vmem:[%s1649_s3 + $0x18] sm:$0xff] }
  0x37   :  { %1166 = vmatpush3.bf16.xpose.msk.msra.mxu0 %vm1319_vm1, %v1161_v43 }
  0x38   :  { %1169 = vmatprep.subr.msk.bf16.mxu0 %vm1319_vm1, %v1167_v50 }
  0x39   :  { %633 = vperm.xlu0 %1223, %v623_v52   ;;  %638 = vperm.xlu1 %1224, %v624_v53   ;;  %v297_v52 = vld [vmem:[%s1649_s3 + $0x20] sm:$0xff]  ;;  %v298_v53 = vld [vmem:[%s1649_s3 + $0x28] sm:$0xff] }
  0x3d   :  { %643 = vperm.xlu0 %1223, %v625_v54   ;;  %648 = vperm.xlu1 %1224, %v626_v55   ;;  %v299_v54 = vld [vmem:[%s1649_s3 + $0x30] sm:$0xff]  ;;  %v300_v55 = vld [vmem:[%s1649_s3 + $0x38] sm:$0xff] }
  0x3f   :  { %1172 = vmatpush3.bf16.xpose.msk.msra.mxu0 %vm1319_vm1, %v1167_v50  ;;  %v295_v50 = vld [vmem:[%s1649_s3 + $0x10] sm:$0xff] }
  0x41   :  { %794 = vperm.xlu0 %1223, %v784_v56   ;;  %799 = vperm.xlu1 %1224, %v785_v57   ;;  %v301_v56 = vld [vmem:[%s1649_s3 + $0x40] sm:$0xff]  ;;  %v302_v57 = vld [vmem:[%s1649_s3 + $0x48] sm:$0xff] }
  0x45   :  { %653 = vperm.xlu0 %1223, %v627_v59   ;;  %804 = vperm.xlu1 %1224, %v786_v61   ;;  %v304_v59 = vld [vmem:[%s1649_s3 + $0x58] sm:$0xff]  ;;  %v306_v61 = vld [vmem:[%s1649_s3 + $0x68] sm:$0xff] }
  0x46   :  { %1030 = vmatmul.mubr.msk.f32.vlgmr.msra.gmra.mrb[0].mxu0 %vm107_vm0, %v52_v58  ;;  %v303_v58 = vld [vmem:[%s1649_s3 + $0x50] sm:$0xff] }
  0x47   :  { %1032 = vmatprep.mubr.msk.f32.mxu0 %vm107_vm0, %v53_v60  ;;  %v305_v60 = vld [vmem:[%s1649_s3 + $0x60] sm:$0xff] }
  0x49   :  { %658 = vperm.xlu0 %1223, %v628_v63   ;;  %809 = vperm.xlu1 %1224, %v787_v1   ;;  %v308_v63 = vld [vmem:[%s1649_s3 + $0x78] sm:$0xff] }
  0x4a   :  { %1033 = vmatmul.mubr.msk.f32.gmra.mrb[2].mxu0 %vm107_vm0, %v54_v62  ;;  %v307_v62 = vld [vmem:[%s1649_s3 + $0x70] sm:$0xff] }
  0x4b   :  { %1035 = vmatprep.mubr.msk.f32.mxu0 %vm107_vm0, %v55_v0  ;;  %v615_v0 = vld [vmem:[%s1651_s5] sm:$0xff] }
  0x4d   :  { %663 = vperm.xlu0 %1223, %v629_v3   ;;  %814 = vperm.xlu1 %1224, %v788_v5  }
  0x4e   :  { %1036 = vmatmul.mubr.msk.f32.gmra.mrb[4].mxu0 %vm107_vm0, %v56_v2 }
  0x4f   :  { %1038 = vmatprep.mubr.msk.f32.mxu0 %vm107_vm0, %v57_v4 }
  0x51   :  { %668 = vperm.xlu0 %1223, %v630_v7   ;;  %819 = vperm.xlu1 %1224, %v789_v8  }
  0x52   :  { %1039 = vmatmul.mubr.msk.f32.gmra.mrb[6].mxu0 %vm107_vm0, %v58_v6 }
  0x55   :  { %824 = vperm.xlu0 %1223, %v790_v9   ;;  %829 = vperm.xlu1 %1224, %v791_v10  }
  0x59   :  { %856 = vperm.xlu0 %1223, %v853_v11  }
  0x85   :  { %v80_v14 = vpop.permute.xlu1 %79 }
  0x86   :  { %v70_v13 = vpop.permute.xlu0 %69 }
  0x89   :  { %v85_v16 = vpop.permute.xlu1 %84 }
  0x8a   :  { %v75_v15 = vpop.permute.xlu0 %74 }
  0x8d   :  { %v95_v26 = vpop.permute.xlu1 %94 }
  0x8e   :  { %v90_v29 = vpop.permute.xlu0 %89 }
  0x91   :  { %v105_v38 = vpop.permute.xlu1 %104 }
  0x92   :  { %v100_v41 = vpop.permute.xlu0 %99 }
  0x98   :  { %v333_v1 = vpop.permute.xlu1 %332  ;;  %v328_v2 = vpop.permute.xlu0 %327 }
  0x9c   :  { %v343_v3 = vpop.permute.xlu1 %342  ;;  %v338_v4 = vpop.permute.xlu0 %337 }
  0xa0   :  { %v353_v5 = vpop.permute.xlu1 %352  ;;  %v348_v6 = vpop.permute.xlu0 %347 }
  0xa4   :  { %v363_v12 = vpop.permute.xlu1 %362 }
 0x119   :  { %v1031_v17 = vpop.f32.mrb[0].mxu0 }
 0x11a   :  { %v252_v18 = vadd.f32 %v1031_v17, %v75_v15  ;;  %v246_v19 = vpop.f32.mrb[1].mxu0  ;;  %v358_v15 = vpop.permute.xlu0 %357 }
 0x11b   :  { %v247_v20 = vadd.f32 %v246_v19, %v70_v13 }
 0x11c   :  { %v286_v21 = vmax.f32 %v252_v18, 0.0 }
 0x11d   :  { %v285_v22 = vmax.f32 %v247_v20, 0.0  ;;  %v1034_v23 = vpop.f32.mrb[2].mxu0 }
 0x11e   :  { %v262_v24 = vadd.f32 %v1034_v23, %v85_v16  ;;  %v256_v25 = vpop.f32.mrb[3].mxu0 }
 0x11f   :  { %v257_v27 = vadd.f32 %v256_v25, %v80_v14  ;;  %v1173_v28 = vpack.c.bf16 %v286_v21, %v285_v22  ;;  %v373_v25 = vpop.permute.xlu1 %372 }
 0x120   :  { %v288_v30 = vmax.f32 %v262_v24, 0.0 }
 0x121   :  { %v287_v31 = vmax.f32 %v257_v27, 0.0  ;;  %v1037_v32 = vpop.f32.mrb[4].mxu0  ;;  %1174 = vmatprep.subr.bf16.mxu1 %v1173_v28 }
 0x122   :  { %v272_v33 = vadd.f32 %v1037_v32, %v95_v26  ;;  %v266_v34 = vpop.f32.mrb[5].mxu0  ;;  %1176 = vmatpush3.bf16.msra.mxu1 %v1173_v28  ;;  %v368_v28 = vpop.permute.xlu0 %367 }
 0x123   :  { %v1177_v35 = vpack.c.bf16 %v288_v30, %v287_v31  ;;  %v267_v36 = vadd.f32 %v266_v34, %v90_v29 }
 0x124   :  { %v290_v37 = vmax.f32 %v272_v33, 0.0 }
 0x125   :  { %v289_v39 = vmax.f32 %v267_v36, 0.0  ;;  %v1040_v40 = vpop.f32.mrb[6].mxu0  ;;  %1178 = vmatprep.subr.bf16.mxu1 %v1177_v35 }
 0x126   :  { %v282_v42 = vadd.f32 %v1040_v40, %v105_v38  ;;  %v276_v43 = vpop.f32.mrb[7].mxu0  ;;  %1180 = vmatpush3.bf16.msra.mxu1 %v1177_v35  ;;  %v378_v40 = vpop.permute.xlu0 %377 }
 0x127   :  { %v1181_v44 = vpack.c.bf16 %v290_v37, %v289_v39  ;;  %v277_v45 = vadd.f32 %v276_v43, %v100_v41  ;;  %v383_v37 = vpop.permute.xlu1 %382 }
 0x128   :  { %v292_v46 = vmax.f32 %v282_v42, 0.0 }
 0x129   :  { %v291_v47 = vmax.f32 %v277_v45, 0.0  ;;  %1182 = vmatprep.subr.bf16.mxu1 %v1181_v44 }
 0x12a   :  { %1184 = vmatpush3.bf16.msra.mxu1 %v1181_v44 }
 0x12b   :  { %v1185_v48 = vpack.c.bf16 %v292_v46, %v291_v47 }
 0x12d   :  { %1186 = vmatprep.subr.bf16.mxu1 %v1185_v48 }
 0x12e   :  { %1188 = vmatpush3.bf16.msra.mxu1 %v1185_v48 }
 0x131   :  { %1058 = vmatmul.mubr.msk.f32.vlgmr.msra.gmra.mrb[0].mxu1 %vm405_vm2, %v294_v49 }
 0x132   :  { %1060 = vmatprep.mubr.msk.f32.mxu1 %vm405_vm2, %v295_v50  ;;  %v393_v50 = vpop.permute.xlu1 %392 }
 0x135   :  { %1061 = vmatmul.mubr.msk.f32.gmra.mrb[2].mxu1 %vm405_vm2, %v296_v51 }
 0x136   :  { %1063 = vmatprep.mubr.msk.f32.mxu1 %vm405_vm2, %v297_v52 }
 0x139   :  { %1064 = vmatmul.mubr.msk.f32.gmra.mrb[4].mxu1 %vm405_vm2, %v298_v53  ;;  %v388_v53 = vpop.permute.xlu0 %387 }
 0x13a   :  { %1066 = vmatprep.mubr.msk.f32.mxu1 %vm405_vm2, %v299_v54 }
 0x13d   :  { %1067 = vmatmul.mubr.msk.f32.gmra.mrb[6].mxu1 %vm405_vm2, %v300_v55 }
 0x13e   :  { %1069 = vmatprep.mubr.msk.f32.mxu1 %vm405_vm2, %v301_v56 }
 0x141   :  { %1070 = vmatmul.mubr.msk.f32.gmra.mrb[8].mxu1 %vm405_vm2, %v302_v57 }
 0x142   :  { %1072 = vmatprep.mubr.msk.f32.mxu1 %vm405_vm2, %v303_v58 }
 0x145   :  { %1073 = vmatmul.mubr.msk.f32.gmra.mrb[10].mxu1 %vm405_vm2, %v304_v59 }
 0x146   :  { %1075 = vmatprep.mubr.msk.f32.mxu1 %vm405_vm2, %v305_v60 }
 0x149   :  { %1076 = vmatmul.mubr.msk.f32.gmra.mrb[12].mxu1 %vm405_vm2, %v306_v61 }
 0x14a   :  { %1078 = vmatprep.mubr.msk.f32.mxu1 %vm405_vm2, %v307_v62  ;;  %v403_v62 = vpop.permute.xlu1 %402 }
 0x14d   :  { %1079 = vmatmul.mubr.msk.f32.gmra.mrb[14].mxu1 %vm405_vm2, %v308_v63 }
 0x14e   :  { %1113 = vmatprep.mubr.f32.mxu1 %v615_v0 }
 0x204   :  { %v1059_v7 = vpop.f32.mrb[0].mxu1 }
 0x205   :  { %v526_v8 = vadd.f32 %v1059_v7, %v333_v1  ;;  %v520_v9 = vpop.f32.mrb[1].mxu1  ;;  %v398_v1 = vpop.permute.xlu0 %397 }
 0x206   :  { %v521_v10 = vadd.f32 %v520_v9, %v328_v2  ;;  %v616_v9 = vld [vmem:[%s1651_s5 + $0x8] sm:$0xff] }
 0x207   :  { %v600_v11 = vmax.f32 %v526_v8, 0.0 }
 0x208   :  { %v599_v13 = vmax.f32 %v521_v10, 0.0  ;;  %v1062_v14 = vpop.f32.mrb[2].mxu1  ;;  %v617_v10 = vld [vmem:[%s1651_s5 + $0x10] sm:$0xff] }
 0x209   :  { %v536_v16 = vadd.f32 %v1062_v14, %v343_v3  ;;  %v530_v17 = vpop.f32.mrb[3].mxu1  ;;  %v621_v14 = vld [vmem:[%s1651_s5 + $0x30] sm:$0xff] }
 0x20a   :  { %v1189_v18 = vpack.c.bf16 %v600_v11, %v599_v13  ;;  %v531_v19 = vadd.f32 %v530_v17, %v338_v4  ;;  %v618_v11 = vld [vmem:[%s1651_s5 + $0x18] sm:$0xff]  ;;  %v620_v13 = vld [vmem:[%s1651_s5 + $0x28] sm:$0xff]  ;;  %v639_v17 = vpop.permute.xlu1 %638 }
 0x20b   :  { %v602_v20 = vmax.f32 %v536_v16, 0.0  ;;  %v634_v16 = vpop.permute.xlu0 %633 }
 0x20c   :  { %v601_v21 = vmax.f32 %v531_v19, 0.0  ;;  %v1065_v22 = vpop.f32.mrb[4].mxu1  ;;  %1190 = vmatprep.subr.bf16.mxu1 %v1189_v18 }
 0x20d   :  { %v546_v23 = vadd.f32 %v1065_v22, %v353_v5  ;;  %v540_v24 = vpop.f32.mrb[5].mxu1  ;;  %1192 = vmatpush3.bf16.msra.mxu1 %v1189_v18 }
 0x20e   :  { %v1193_v26 = vpack.c.bf16 %v602_v20, %v601_v21  ;;  %v541_v27 = vadd.f32 %v540_v24, %v348_v6  ;;  %v649_v19 = vpop.permute.xlu1 %648 }
 0x20f   :  { %v604_v29 = vmax.f32 %v546_v23, 0.0  ;;  %v644_v18 = vpop.permute.xlu0 %643 }
 0x210   :  { %v603_v30 = vmax.f32 %v541_v27, 0.0  ;;  %v1068_v31 = vpop.f32.mrb[6].mxu1  ;;  %1194 = vmatprep.subr.bf16.mxu1 %v1193_v26 }
 0x211   :  { %v556_v32 = vadd.f32 %v1068_v31, %v363_v12  ;;  %v550_v33 = vpop.f32.mrb[7].mxu1  ;;  %1196 = vmatpush3.bf16.msra.mxu1 %v1193_v26  ;;  %v619_v12 = vld [vmem:[%s1651_s5 + $0x20] sm:$0xff] }
 0x212   :  { %v1197_v34 = vpack.c.bf16 %v604_v29, %v603_v30  ;;  %v551_v35 = vadd.f32 %v550_v33, %v358_v15  ;;  %v622_v15 = vld [vmem:[%s1651_s5 + $0x38] sm:$0xff]  ;;  %v800_v21 = vpop.permute.xlu1 %799  ;;  %s1254_s5 = smov [#allocation3]  }
 0x213   :  { %v606_v36 = vmax.f32 %v556_v32, 0.0  ;;  %v795_v20 = vpop.permute.xlu0 %794  ;;  %s877_s12 = sshll.u32 %s1254_s5, 4  ;;  %s878_s12 = int_to_ptr.vmem [resolvable:$true] %s877_s12 }
 0x214   :  { %v605_v38 = vmax.f32 %v551_v35, 0.0  ;;  %v1071_v39 = vpop.f32.mrb[8].mxu1  ;;  %1198 = vmatprep.subr.bf16.mxu1 %v1197_v34  ;;  %s1229_s13 = scalar_lea.vmem %s878_s12, 16  ;;  %s1233_s14 = scalar_lea.vmem %s878_s12, 32 }
 0x215   :  { %v566_v41 = vadd.f32 %v1071_v39, %v373_v25  ;;  %v560_v42 = vpop.f32.mrb[9].mxu1  ;;  %1200 = vmatpush3.bf16.msra.mxu1 %v1197_v34  ;;  %p1230_p0 = scmp.ne.s32.totalorder %s878_s12, %s1229_s13  ;;  %p1234_p1 = scmp.lt.s32.totalorder %s878_s12, %s878_s12 }
 0x216   :  { %v1201_v43 = vpack.c.bf16 %v606_v36, %v605_v38  ;;  %v561_v44 = vadd.f32 %v560_v42, %v368_v28  ;;  %v805_v23 = vpop.permute.xlu1 %804  ;;  %p1235_p2 = scmp.lt.s32.totalorder %s1233_s14, %s1229_s13 }
 0x217   :  { %v608_v45 = vmax.f32 %v566_v41, 0.0  ;;  %v654_v22 = vpop.permute.xlu0 %653 }
 0x218   :  { %v607_v46 = vmax.f32 %v561_v44, 0.0  ;;  %v1074_v47 = vpop.f32.mrb[10].mxu1  ;;  %1202 = vmatprep.subr.bf16.mxu1 %v1201_v43  ;;  %p1236_p3 = por %p1235_p2, %p1234_p1 }
 0x219   :  { %v576_v48 = vadd.f32 %v1074_v47, %v383_v37  ;;  %v570_v49 = vpop.f32.mrb[11].mxu1  ;;  %1204 = vmatpush3.bf16.msra.mxu1 %v1201_v43 }
 0x21a   :  { %v1205_v51 = vpack.c.bf16 %v608_v45, %v607_v46  ;;  %v571_v52 = vadd.f32 %v570_v49, %v378_v40  ;;  %v810_v26 = vpop.permute.xlu1 %809  ;;  %p1237_p4 = pnand %p1236_p3, %p1230_p0 }
 0x21b   :  { %v610_v54 = vmax.f32 %v576_v48, 0.0  ;;  %v659_v24 = vpop.permute.xlu0 %658 }
 0x21c   :  { %v609_v55 = vmax.f32 %v571_v52, 0.0  ;;  %v1077_v56 = vpop.f32.mrb[12].mxu1  ;;  %1206 = vmatprep.subr.bf16.mxu1 %v1205_v51 }
 0x21d   :  { %v586_v57 = vadd.f32 %v1077_v56, %v393_v50  ;;  %v580_v58 = vpop.f32.mrb[13].mxu1  ;;  %1208 = vmatpush3.bf16.msra.mxu1 %v1205_v51 }
 0x21e   :  { %v1209_v59 = vpack.c.bf16 %v610_v54, %v609_v55  ;;  %v581_v60 = vadd.f32 %v580_v58, %v388_v53  ;;  %v815_v39 = vpop.permute.xlu1 %814 }
 0x21f   :  { %v612_v61 = vmax.f32 %v586_v57, 0.0  ;;  %v664_v33 = vpop.permute.xlu0 %663 }
 0x220   :  { %v611_v63 = vmax.f32 %v581_v60, 0.0  ;;  %v1080_v0 = vpop.f32.mrb[14].mxu1  ;;  %1210 = vmatprep.subr.bf16.mxu1 %v1209_v59 }
 0x221   :  { %v596_v2 = vadd.f32 %v1080_v0, %v403_v62  ;;  %v590_v3 = vpop.f32.mrb[15].mxu1  ;;  %1212 = vmatpush3.bf16.msra.mxu1 %v1209_v59 }
 0x222   :  { %v1213_v4 = vpack.c.bf16 %v612_v61, %v611_v63  ;;  %v591_v5 = vadd.f32 %v590_v3, %v398_v1  ;;  %v820_v54 = vpop.permute.xlu1 %819 }
 0x223   :  { %v614_v6 = vmax.f32 %v596_v2, 0.0  ;;  %v669_v48 = vpop.permute.xlu0 %668 }
 0x224   :  { %v613_v7 = vmax.f32 %v591_v5, 0.0  ;;  %1214 = vmatprep.subr.bf16.mxu1 %v1213_v4 }
 0x225   :  { %1216 = vmatpush3.bf16.msra.mxu1 %v1213_v4 }
 0x226   :  { %v1217_v8 = vpack.c.bf16 %v614_v6, %v613_v7  ;;  %v830_v3 = vpop.permute.xlu1 %829  ;;  %v859_v6 = vlaneseq }
 0x227   :  { %v825_v0 = vpop.permute.xlu0 %824 }
 0x228   :  { %1218 = vmatprep.subr.bf16.mxu1 %v1217_v8 }
 0x229   :  { %1220 = vmatpush3.bf16.msra.mxu1 %v1217_v8 }
 0x22c   :  { %1114 = vmatmul.mubr.f32.vlgmr.msra.gmra.mrb[16].mxu1 %v616_v9  ;;  %v860_v9 = vshrl.u32 %v859_v6, 7 }
 0x22d   :  { %1116 = vmatprep.mubr.f32.mxu1 %v617_v10 }
 0x230   :  { %1117 = vmatmul.mubr.f32.gmra.mrb[18].mxu1 %v618_v11 }
 0x231   :  { %1119 = vmatprep.mubr.f32.mxu1 %v619_v12  ;;  %v861_v12 = vsub.s32 0, %v860_v9 }
 0x234   :  { %1120 = vmatmul.mubr.f32.gmra.mrb[20].mxu1 %v620_v13 }
 0x235   :  { %1122 = vmatprep.mubr.f32.mxu1 %v621_v14  ;;  %v857_v14 = vpop.permute.xlu0 %856 }
 0x238   :  { %1123 = vmatmul.mubr.f32.gmra.mrb[22].mxu1 %v622_v15 }
 0x2ff   :  { %v1115_v25 = vpop.f32.mrb[16].mxu1 }
 0x300   :  { %v743_v27 = vadd.f32 %v1115_v25, %v639_v17  ;;  %v737_v28 = vpop.f32.mrb[17].mxu1 }
 0x301   :  { %v738_v29 = vadd.f32 %v737_v28, %v634_v16  ;;  %v862_v16 = vrot.slane %v857_v14, %v861_v12 }
 0x302   :  { %v777_v30 = vmax.f32 %v743_v27, 0.0 }
 0x303   :  { %v776_v31 = vmax.f32 %v738_v29, 0.0  ;;  %v1118_v32 = vpop.f32.mrb[18].mxu1 }
 0x304   :  { %v833_v34 = vmul.f32 %v800_v21, %v777_v30  ;;  %v753_v35 = vadd.f32 %v1118_v32, %v649_v19  ;;  %v747_v36 = vpop.f32.mrb[19].mxu1 }
 0x305   :  { %v832_v37 = vmul.f32 %v795_v20, %v776_v31  ;;  %v748_v38 = vadd.f32 %v747_v36, %v644_v18 }
 0x306   :  { %v779_v41 = vmax.f32 %v753_v35, 0.0 }
 0x307   :  { %v840_v40 = vadd.f32 %v833_v34, %v832_v37  ;;  %v778_v42 = vmax.f32 %v748_v38, 0.0  ;;  %v1121_v43 = vpop.f32.mrb[20].mxu1 }
 0x308   :  { %v763_v44 = vadd.f32 %v1121_v43, %v659_v24  ;;  %v757_v45 = vpop.f32.mrb[21].mxu1  ;;  %v835_v49 = vmul.f32 %v810_v26, %v779_v41 }
 0x309   :  { %v834_v46 = vmul.f32 %v805_v23, %v778_v42  ;;  %v758_v47 = vadd.f32 %v757_v45, %v654_v22 }
 0x30a   :  { %v781_v51 = vmax.f32 %v763_v44, 0.0 }
 0x30b   :  { %v841_v50 = vadd.f32 %v840_v40, %v834_v46  ;;  %v780_v52 = vmax.f32 %v758_v47, 0.0  ;;  %v1124_v53 = vpop.f32.mrb[22].mxu1 }
 0x30c   :  { %v773_v55 = vadd.f32 %v1124_v53, %v669_v48  ;;  %v767_v56 = vpop.f32.mrb[23].mxu1  ;;  %v837_v60 = vmul.f32 %v820_v54, %v781_v51 }
 0x30d   :  { %v836_v57 = vmul.f32 %v815_v39, %v780_v52  ;;  %v842_v58 = vadd.f32 %v841_v50, %v835_v49  ;;  %v768_v59 = vadd.f32 %v767_v56, %v664_v33 }
 0x30e   :  { %v783_v62 = vmax.f32 %v773_v55, 0.0 }
 0x30f   :  { %v843_v61 = vadd.f32 %v842_v58, %v836_v57  ;;  %v782_v63 = vmax.f32 %v768_v59, 0.0 }
 0x310   :  { %v839_v4 = vmul.f32 %v830_v3, %v783_v62 }
 0x311   :  { %v838_v1 = vmul.f32 %v825_v0, %v782_v63  ;;  %v844_v2 = vadd.f32 %v843_v61, %v837_v60 }
 0x313   :  { %v845_v5 = vadd.f32 %v844_v2, %v838_v1 }
 0x315   :  { %v846_v7 = vadd.f32 %v845_v5, %v839_v4 }
 0x317   :  { %v847_v8 = vrot.slane %v846_v7, 4 }
 0x319   :  { %v848_v10 = vadd.f32 %v847_v8, %v846_v7 }
 0x31b   :  { %v849_v11 = vrot.slane %v848_v10, 2 }
 0x31d   :  { %v850_v13 = vadd.f32 %v849_v11, %v848_v10 }
 0x31f   :  { %v851_v15 = vrot.slane %v850_v13, 1 }
 0x321   :  { %v852_v17 = vadd.f32 %v851_v15, %v850_v13 }
 0x323   :  { %v863_v18 = vadd.f32 %v862_v16, %v852_v17 }
 0x325   :  { %v864_v19 = vsub.f32 0.0, %v863_v18 }
 0x327   :  { %v865_v20 = vmul.f32 1.442695, %v864_v19 }
 0x329   :  { %1225 = vpow2.f32 %v865_v20 }
 0x333   :  { %v1226_v21 = vpop.eup %1225 }
 0x334   :  { %v867_v22 = vadd.f32 1.0, %v1226_v21 }
 0x336   :  { %1227 = vrcp.f32 %v867_v22 }
 0x340   :  { %v1228_v23 = vpop.eup %1227 }
 0x341   :  { %870 = vst [vmem:[#allocation3] sm:$0x1] %v1228_v23 }
 0x342   :  { %1240 = shalt.err (!%p1237_p4)
}
 0x343   :  { %s1241_s8 = scalar_lea.hbm %s1655_s9, 16 }
 0x344   :  { %p1242_p5 = scmp.ne.s32.totalorder %s1655_s9, %s1241_s8  ;;  %p1245_p6 = scmp.lt.u32.totalorder %s1241_s8, %s1655_s9 }
 0x346   :  { %p1247_p7 = pnand %p1245_p6, %p1242_p5 }
 0x348   :  { %1250 = shalt.err (!%p1247_p7)
}
 0x349   :  { %880 = dma.vmem_to_hbm [thread:$0]  %s878_s12, 16, %s1655_s9, [#allocation4]  }
 0x34a   :  { %1251 = dma.done.wait [#allocation4], 16  }
 0x34b   :  { %1252 = vsyncadd [#allocation4], 4294967280 }
 0x34c   :  { %884 = vsyncpa [#allocation4], 1 }

</bundles_post_ra>
